<compile_context>
chip_gen: v5e
topology: v5e:2x2
jax: 0.10.0
libtpu: 0.0.40
codegen_flags: <defaults>
</compile_context>

<pallas_src>
import math
import functools

import jax
import jax.numpy as jnp
from jax import lax
from jax.experimental import pallas as pl
from jax.experimental.pallas import tpu as pltpu


_LANE = 128
_VMEM_BUDGET_BYTES = 16 * 1024 * 1024  # total double-buffered working-set target
_HASH_MUL = 0x045D9F3B                 # < 2^31, odd; "hash32" mixing constant


def build_pe_table(d_model: int, max_len: int) -> jnp.ndarray:
    """Sinusoidal positional-encoding table [1, max_len, d_model] (matches torch init)."""
    position = jnp.arange(0, max_len, dtype=jnp.float32)[:, None]
    div_term = jnp.exp(
        jnp.arange(0, d_model, 2, dtype=jnp.float32) * -(math.log(10000.0) / d_model)
    )
    pe = jnp.zeros((max_len, d_model), dtype=jnp.float32)
    pe = pe.at[:, 0::2].set(jnp.sin(position * div_term))
    pe = pe.at[:, 1::2].set(jnp.cos(position * div_term))
    return pe[None, :, :]


def _round_up(n: int, m: int) -> int:
    return ((n + m - 1) // m) * m


def _divisors_desc(n: int):
    return [d for d in range(n, 0, -1) if n % d == 0]


def _legal_t_tiles(T: int):
    """Legal second-minor tile sizes along T, descending: multiples of 8 dividing T,
    plus the full extent (always legal)."""
    tiles = [t for t in _divisors_desc(T) if t % 8 == 0]
    if not tiles or tiles[0] != T:
        tiles = [T] + tiles
    return tiles


def _pick_tiles(B: int, T: int, x_itemsize: int, budget: int = _VMEM_BUDGET_BYTES):
    """Pick (tile_b, tile_t) so the double-buffered x/out/pe blocks fit `budget`.
    Prefers folding the whole batch into the block (1-D effective grid over T)."""
    t_tiles = _legal_t_tiles(T)

    def footprint(tb: int, tt: int) -> int:
        x_blk = tb * tt * _LANE * x_itemsize      # x block (out block is the same size)
        pe_blk = tt * _LANE * 4                   # pe block is always f32
        return 2 * (2 * x_blk + pe_blk)           # double-buffered

    t_min = t_tiles[-1]
    tile_b = 1
    for tb in _divisors_desc(B):
        if footprint(tb, t_min) <= budget:
            tile_b = tb
            break
    tile_t = t_min
    for tt in t_tiles:
        if footprint(tile_b, tt) <= budget:
            tile_t = tt
            break
    return tile_b, tile_t


def _make_kernel(dropout_p: float, training: bool, *, T: int):
    use_dropout = bool(training) and dropout_p > 0.0

    if not use_dropout:
        def eval_kernel(x_ref, pe_ref, o_ref):
            y = x_ref[...].astype(jnp.float32) + pe_ref[...]
            o_ref[...] = y.astype(o_ref.dtype)
        return eval_kernel

    # Integer-domain dropout on the top 31 bits of the hash (all literals fit int32).
    # NOTE: threshold is clamped, so p extremely close to 1.0 keeps with probability
    # ~2^-31 instead of exactly (1-p); negligible for practical p.
    threshold = min(int(round(dropout_p * 2147483648.0)), 2147483647)
    scale = 1.0 / (1.0 - dropout_p)

    def train_kernel(seed_ref, x_ref, pe_ref, o_ref):
        y = x_ref[...].astype(jnp.float32) + pe_ref[...]

        tb, tt, lane = x_ref.shape                 # static block shape
        b0 = pl.program_id(1) * tb
        t0 = pl.program_id(0) * tt
        bi = lax.broadcasted_iota(jnp.int32, (tb, tt, lane), 0) + b0
        ti = lax.broadcasted_iota(jnp.int32, (tb, tt, lane), 1) + t0
        li = lax.broadcasted_iota(jnp.int32, (tb, tt, lane), 2)
        # Counter-based RNG: hash(global element index ^ seed) -> uniform 32-bit value.
        # seed is non-negative, so the int32 value is >= 0 before the uint32 cast.
        h = (((bi * T + ti) * lane + li) ^ seed_ref[0]).astype(jnp.uint32)
        h = h ^ (h >> 16)
        h = h * _HASH_MUL
        h = h ^ (h >> 16)
        h = h * _HASH_MUL
        h = h ^ (h >> 16)
        keep = (h >> 1) >= threshold               # P(keep) = 1 - p
        o_ref[...] = jnp.where(keep, y * scale, 0.0).astype(o_ref.dtype)

    return train_kernel


@functools.partial(jax.jit, static_argnames=("dropout_p", "training"))
def positional_encoding(x, pe, rng_key=None, *, dropout_p=0.1, training=False):
    """x: [B, S, D]; pe: [1, max_len, D] float32. rng_key required when training."""
    B, S, D = x.shape
    use_dropout = bool(training) and dropout_p > 0.0
    if use_dropout and rng_key is None:
        raise ValueError("rng_key must be provided when training=True and dropout_p > 0")

    # Lane-dense flatten: [B, S*D] padded to a multiple of 128 -> [B, T, 128].
    N = S * D
    Np = _round_up(N, _LANE)
    if N >= 64 * 1024:
        Np = _round_up(N, 8 * _LANE)   # also make T a multiple of 8 (cheap at this size)
    T = Np // _LANE

    x_flat = x.reshape(B, N)
    pe_flat = pe[:, :S, :].astype(jnp.float32).reshape(1, N)
    if Np != N:
        x_flat = jnp.pad(x_flat, ((0, 0), (0, Np - N)))
        pe_flat = jnp.pad(pe_flat, ((0, 0), (0, Np - N)))
    x_r = x_flat.reshape(B, T, _LANE)
    pe_r = pe_flat.reshape(1, T, _LANE)

    tile_b, tile_t = _pick_tiles(B, T, x.dtype.itemsize)
    grid = (T // tile_t, B // tile_b)      # batch-tile axis innermost; usually size 1
    blk = (tile_b, tile_t, _LANE)

    kernel = _make_kernel(dropout_p, training, T=T)

    in_specs = [
        pl.BlockSpec(blk, lambda t, b: (b, t, 0)),                  # x
        pl.BlockSpec((1, tile_t, _LANE), lambda t, b: (0, t, 0)),   # pe (broadcast over tile_b)
    ]
    args = [x_r, pe_r]
    if use_dropout:
        seed = jax.random.randint(rng_key, (1,), minval=0, maxval=2147483647,
                                  dtype=jnp.int32)
        in_specs.insert(0, pl.BlockSpec(memory_space=pltpu.MemorySpace.SMEM))
        args.insert(0, seed)

    fp = 2 * (2 * tile_b * tile_t * _LANE * x.dtype.itemsize + tile_t * _LANE * 4)
    vmem_limit = min(48 * 1024 * 1024, max(2 * fp + 4 * 1024 * 1024, 24 * 1024 * 1024))

    out = pl.pallas_call(
        kernel,
        out_shape=jax.ShapeDtypeStruct((B, T, _LANE), x.dtype),
        grid=grid,
        in_specs=in_specs,
        out_specs=pl.BlockSpec(blk, lambda t, b: (b, t, 0)),
        compiler_params=pltpu.CompilerParams(
            dimension_semantics=("parallel", "parallel"),
            vmem_limit_bytes=vmem_limit,
        ),
    )(*args)

    out_flat = out.reshape(B, Np)
    if Np != N:
        out_flat = out_flat[:, :N]
    return out_flat.reshape(B, S, D)


if __name__ == "__main__":
    B, S, D = 2, 8, 32
    max_len = 64

    key = jax.random.PRNGKey(0)
    x = jax.random.normal(key, (B, S, D), dtype=jnp.float32)
    pe = build_pe_table(D, max_len)
    ref = x + pe[:, :S, :]

    # Eval-mode forward (dropout is identity): must match the reference.
    out = positional_encoding(x, pe, dropout_p=0.1, training=False)
    out = jax.block_until_ready(out)
    assert out.shape == (B, S, D) and out.dtype == x.dtype
    assert jnp.allclose(out, ref, atol=1e-6, rtol=1e-6), "eval mismatch vs reference"

    # Training-mode forward (inverted dropout): each element is either ~0 (dropped)
    # or ref/(1-p) (kept), and the drop rate sits in a loose band around p.
    # TODO(synk): the dropout mask cannot bitwise-match torch's RNG stream; semantics only.
    p = 0.1
    out_train = positional_encoding(x, pe, jax.random.PRNGKey(1),
                                    dropout_p=p, training=True)
    out_train = jax.block_until_ready(out_train)
    assert out_train.shape == (B, S, D)
    scaled_ref = ref / (1.0 - p)
    is_kept = jnp.isclose(out_train, scaled_ref, atol=1e-5, rtol=1e-5)
    is_dropped = jnp.abs(out_train) <= 1e-6
    assert bool(jnp.all(is_kept | is_dropped)), "training output neither kept nor dropped"
    drop_rate = float(jnp.mean((~is_kept).astype(jnp.float32)))
    assert 0.0 < drop_rate < 0.4, f"implausible dropout rate {drop_rate}"

    print("KERNEL_OK")
</pallas_src>

<mosaic_0001>
module attributes {stable_mosaic.version = 11 : i64} {
  func.func @eval_kernel(%arg0: i32, %arg1: i32, %arg2: memref<2x2x128xf32, #tpu.memory_space<vmem>>, %arg3: memref<1x2x128xf32, #tpu.memory_space<vmem>>, %arg4: memref<2x2x128xf32, #tpu.memory_space<vmem>>) attributes {dimension_semantics = [#tpu.dimension_semantics<parallel>, #tpu.dimension_semantics<parallel>], iteration_bounds = array<i64: 1, 1>, scalar_prefetch = 0 : i64, scratch_operands = 0 : i64, tpu.core_type = #tpu.core_type<tc>, window_params = [{transform_indices = @transform_0, window_bounds = array<i64: 2, 2, 128>}, {transform_indices = @transform_1, window_bounds = array<i64: 1, 2, 128>}, {transform_indices = @transform_2, window_bounds = array<i64: 2, 2, 128>}]} {
    %c0 = arith.constant 0 : index
    %c0_0 = arith.constant 0 : index
    %c0_1 = arith.constant 0 : index
    %0 = vector.load %arg2[%c0, %c0_0, %c0_1] : memref<2x2x128xf32, #tpu.memory_space<vmem>>, vector<2x2x128xf32>
    %c0_2 = arith.constant 0 : index
    %c0_3 = arith.constant 0 : index
    %c0_4 = arith.constant 0 : index
    %1 = vector.load %arg3[%c0_2, %c0_3, %c0_4] : memref<1x2x128xf32, #tpu.memory_space<vmem>>, vector<1x2x128xf32>
    %2 = vector.broadcast %1 : vector<1x2x128xf32> to vector<2x2x128xf32>
    %3 = arith.addf %0, %2 : vector<2x2x128xf32>
    %c0_5 = arith.constant 0 : index
    %c0_6 = arith.constant 0 : index
    %c0_7 = arith.constant 0 : index
    %4 = vector.load %arg4[%c0_5, %c0_6, %c0_7] : memref<2x2x128xf32, #tpu.memory_space<vmem>>, vector<2x2x128xf32>
    tpu.vector_store %arg4[%c0_5, %c0_6, %c0_7], %3 {strides = array<i32>} : memref<2x2x128xf32, #tpu.memory_space<vmem>>, vector<2x2x128xf32>,
    return
  }
  func.func @transform_0(%arg0: i32, %arg1: i32) -> (i32, i32, i32) {
    %c0_i32 = arith.constant 0 : i32
    %c0_i32_0 = arith.constant 0 : i32
    return %arg1, %arg0, %c0_i32 : i32, i32, i32
  }
  func.func @transform_1(%arg0: i32, %arg1: i32) -> (i32, i32, i32) {
    %c0_i32 = arith.constant 0 : i32
    %c0_i32_0 = arith.constant 0 : i32
    %c0_i32_1 = arith.constant 0 : i32
    return %c0_i32, %arg0, %c0_i32_0 : i32, i32, i32
  }
  func.func @transform_2(%arg0: i32, %arg1: i32) -> (i32, i32, i32) {
    %c0_i32 = arith.constant 0 : i32
    %c0_i32_0 = arith.constant 0 : i32
    return %arg1, %arg0, %c0_i32 : i32, i32, i32
  }
}

</mosaic_0001>

<bundles_post_ra>
// kernel: positional_encoding.1
= control target key start
LH: loop header
LB: loop body
LE: loop exit
PB: predicated region body
PF: predicated region fallthrough
CT: control target
= control target key end

     0   :  { %s52_s0 = inlined_call_operand.vmem [shape: f32[2,2,128], index: 0, kind: input, shape index: {}]   ;;  %s53_s1 = inlined_call_operand.vmem [shape: f32[1,2,128], index: 1, kind: input, shape index: {}]   ;;  %s54_s2 = inlined_call_operand.vmem [shape: f32[2,2,128], index: 2, kind: output, shape index: {}]  }
   0x1   :  { %v11_v0 = vld [vmem:[%s52_s0] sm:$0x3]  ;;  %v12_v2 = vld [vmem:[%s52_s0 + $0x2] sm:$0x3] }
   0x2   :  { %v13_v1 = vld [vmem:[%s53_s1] sm:$0x3] }
   0x3   :  { %v14_v3 = vadd.f32 %v13_v1, %v11_v0  ;;  %v15_v4 = vadd.f32 %v13_v1, %v12_v2 }
   0x5   :  { %16 = vst [vmem:[%s54_s2] sm:$0x3] %v14_v3 }
   0x6   :  { %17 = vst [vmem:[%s54_s2 + $0x2] sm:$0x3] %v15_v4 }

</bundles_post_ra>
